<compile_context>
chip_gen: v6e
topology: v6e:2x2x1
jax: 0.10.0
libtpu: 0.0.40
codegen_flags: <defaults>
</compile_context>

<pallas_src>
import functools
import math

import jax
import jax.numpy as jnp
from jax import lax
from jax.experimental import pallas as pl
from jax.experimental.pallas import tpu as pltpu


def _round_up(x, m):
    return ((x + m - 1) // m) * m


def _round_down(x, m):
    return (x // m) * m


def _vmem_capacity_bytes(default=64 << 20):
    """Generation-aware VMEM capacity; conservative (v7x) fallback."""
    try:
        info = pltpu.get_tpu_info()
        cap = getattr(info, "vmem_capacity_bytes", None)
        if cap:
            return int(cap)
    except Exception:
        pass
    return default


def _choose_tiles(total_rows, lane_n, dtype):
    """Pick (tile_rows, tile_lanes, vmem_limit_bytes) for the streaming add."""
    dtype_bytes = jnp.dtype(dtype).itemsize
    # Sublane packing multiple: 8 (f32), 16 (bf16), 32 (int8/fp8).
    sublane = max(8, 32 // max(dtype_bytes, 1))

    vmem_cap = _vmem_capacity_bytes()
    # Per-buffer byte target. in + out double-buffered => 4 such buffers, which
    # stays well under half of physical VMEM on every generation:
    #   v7x 64 MiB -> ~6.4 MiB/buffer, v5e/v6e 128 MiB -> 8 MiB/buffer.
    budget = max(2 << 20, min(8 << 20, vmem_cap // 10))

    # Lane tiling only when even a single sublane-row strip overflows the
    # budget (very wide W*C). Lane tiles are multiples of 128 (unmasked vst).
    if lane_n > 128 and sublane * lane_n * dtype_bytes > budget:
        max_lanes = max(128, _round_down(budget // (sublane * dtype_bytes), 128))
        tile_lanes = int(min(_round_down(lane_n, 128), max_lanes))
    else:
        tile_lanes = int(lane_n)
    n_lane_blocks = pl.cdiv(lane_n, tile_lanes)

    # Row tiling: largest sublane multiple within the byte budget (bytes-driven,
    # no fixed row cap, no full-extent fallback).
    row_bytes = tile_lanes * dtype_bytes
    max_rows = max(sublane, _round_down(budget // row_bytes, sublane))
    if total_rows <= sublane:
        tile_rows = int(total_rows)  # tiny input: full-extent row block
    else:
        tile_rows = int(min(max_rows, _round_down(total_rows, sublane)))
        # Megacore (v7x): make sure there are >= 2 grid steps when possible so
        # both TensorCores get work. No effect on single-TC v5e/v6e.
        if (pl.cdiv(total_rows, tile_rows) * n_lane_blocks < 2
                and total_rows >= 2 * sublane):
            tile_rows = max(sublane, _round_down(total_rows // 2, sublane))

    # Right-sized scoped-VMEM limit: 4 I/O buffers + the two (1, L) f32 aux
    # inputs (double-buffered, padded to 8 sublanes) + margin for intermediates.
    tile_bytes = tile_rows * tile_lanes * dtype_bytes
    aux_bytes = 2 * 2 * 8 * tile_lanes * 4
    vmem_limit = 4 * tile_bytes + aux_bytes + max(4 << 20, 2 * tile_bytes)
    vmem_limit = int(min(vmem_limit, int(vmem_cap * 0.9)))
    return tile_rows, tile_lanes, vmem_limit


def _pos_embed_add_kernel(row_gain_ref, col_bias_ref, x_ref, o_ref, *,
                          tile_rows, height):
    # Block shapes: x/o -> (tile_rows, tile_lanes); aux -> (1, tile_lanes).
    # Global fused-row index for this block -> row index within the image.
    row0 = pl.program_id(0) * tile_rows
    rows = row0 + lax.broadcasted_iota(jnp.int32, (tile_rows, 1), 0)
    row_in_img = (rows % height).astype(jnp.float32)                 # (T, 1)

    # position[r, l] = i (if channel < d_half) else j
    #               == row_in_img * row_gain + col_bias   (aux hoisted to wrapper)
    pos = row_in_img * row_gain_ref[...] + col_bias_ref[...]         # (T, Lt)
    o_ref[...] = x_ref[...] + pos.astype(o_ref.dtype)


def position_embedding_sine(x, d_model_half, temperature=10000, *,
                            donate_x=False):
    """x: (N, H, W, C) with C == 2 * d_model_half. Returns x + position."""
    n, h, w, c = x.shape
    assert c == 2 * d_model_half

    # The reference also constructs div_term / pe_h / pe_w; they never reach
    # the output (dead code in the original forward), so they are omitted.
    _ = math.log(temperature)  # parity with the reference constants only

    total_rows = n * h
    lane_n = w * c
    dtype_bytes = jnp.dtype(x.dtype).itemsize

    # Free view for contiguous NHWC: lane axis becomes W*C (dense stores).
    x2 = x.reshape(total_rows, lane_n)

    # Per-lane vectors hoisted out of the kernel body (no per-step int div/mod):
    #   row_gain[l] = 1 if channel(l) < d_half else 0
    #   col_bias[l] = 0 if channel(l) < d_half else column(l)
    lane = jnp.arange(lane_n, dtype=jnp.int32)
    in_row_half = (lane % c) < d_model_half
    col = (lane // c).astype(jnp.float32)
    row_gain = jnp.where(in_row_half, 1.0, 0.0).astype(jnp.float32)[None, :]
    col_bias = jnp.where(in_row_half, 0.0, col).astype(jnp.float32)[None, :]

    tile_rows, tile_lanes, vmem_limit = _choose_tiles(total_rows, lane_n,
                                                      x.dtype)
    grid = (pl.cdiv(total_rows, tile_rows), pl.cdiv(lane_n, tile_lanes))

    kernel = functools.partial(_pos_embed_add_kernel,
                               tile_rows=tile_rows, height=h)

    extra_kwargs = {}
    if donate_x:
        # x2 is operand index 2 (after row_gain, col_bias); same shape/dtype as out.
        extra_kwargs["input_output_aliases"] = {2: 0}

    out2 = pl.pallas_call(
        kernel,
        out_shape=jax.ShapeDtypeStruct((total_rows, lane_n), x.dtype),
        grid_spec=pltpu.PrefetchScalarGridSpec(
            num_scalar_prefetch=0,
            grid=grid,
            in_specs=[
                pl.BlockSpec((1, tile_lanes), lambda r, l: (0, l)),
                pl.BlockSpec((1, tile_lanes), lambda r, l: (0, l)),
                pl.BlockSpec((tile_rows, tile_lanes), lambda r, l: (r, l)),
            ],
            out_specs=pl.BlockSpec((tile_rows, tile_lanes),
                                   lambda r, l: (r, l)),
        ),
        compiler_params=pltpu.CompilerParams(
            dimension_semantics=("parallel", "parallel"),
            vmem_limit_bytes=vmem_limit,
        ),
        cost_estimate=pl.CostEstimate(
            flops=2 * total_rows * lane_n,
            transcendentals=0,
            bytes_accessed=2 * total_rows * lane_n * dtype_bytes,
        ),
        **extra_kwargs,
    )(row_gain, col_bias, x2)

    return out2.reshape(n, h, w, c)


def _reference(x, d_model_half):
    """Pure-JAX reference of the PyTorch forward semantics."""
    n, h, w, _ = x.shape
    pos_h = jnp.broadcast_to(
        jnp.arange(h, dtype=x.dtype)[None, :, None, None],
        (n, h, w, d_model_half))
    pos_w = jnp.broadcast_to(
        jnp.arange(w, dtype=x.dtype)[None, None, :, None],
        (n, h, w, d_model_half))
    return x + jnp.concatenate([pos_h, pos_w], axis=-1)


if __name__ == "__main__":
    key = jax.random.PRNGKey(0)
    N, H, W = 2, 16, 16
    d_model_half = 4
    C = 2 * d_model_half

    x = jax.random.normal(key, (N, H, W, C), dtype=jnp.float32)
    out = jax.block_until_ready(position_embedding_sine(x, d_model_half))
    ref = _reference(x, d_model_half)
    assert out.shape == x.shape and out.dtype == x.dtype
    assert jnp.allclose(out, ref, atol=1e-6), "mismatch vs reference"

    # Tail-masking path: total_rows (3*12=36) is not a multiple of the row tile,
    # exercising the partial last block that the review asked to verify.
    x_tail = jax.random.normal(jax.random.PRNGKey(1), (3, 12, 8, C),
                               dtype=jnp.float32)
    out_tail = jax.block_until_ready(position_embedding_sine(x_tail,
                                                             d_model_half))
    assert jnp.allclose(out_tail, _reference(x_tail, d_model_half),
                        atol=1e-6), "mismatch vs reference (tail block)"

    print("KERNEL_OK")
</pallas_src>

<mosaic_0001>
module attributes {stable_mosaic.version = 11 : i64} {
  func.func @_pos_embed_add_kernel(%arg0: i32, %arg1: i32, %arg2: memref<1x128xf32, #tpu.memory_space<vmem>>, %arg3: memref<1x128xf32, #tpu.memory_space<vmem>>, %arg4: memref<16x128xf32, #tpu.memory_space<vmem>>, %arg5: memref<16x128xf32, #tpu.memory_space<vmem>>) attributes {dimension_semantics = [#tpu.dimension_semantics<parallel>, #tpu.dimension_semantics<parallel>], iteration_bounds = array<i64: 2, 1>, scalar_prefetch = 0 : i64, scratch_operands = 0 : i64, tpu.core_type = #tpu.core_type<tc>, window_params = [{transform_indices = @transform_0, window_bounds = array<i64: 1, 128>}, {transform_indices = @transform_1, window_bounds = array<i64: 1, 128>}, {transform_indices = @transform_2, window_bounds = array<i64: 16, 128>}, {transform_indices = @transform_3, window_bounds = array<i64: 16, 128>}]} {
    %c16_i32 = arith.constant 16 : i32
    %0 = arith.muli %arg0, %c16_i32 : i32
    %1 = tpu.iota {dimensions = array<i32: 0>} : vector<16x1xi32>
    %2 = vector.broadcast %0 : i32 to vector<16x1xi32>
    %3 = arith.addi %2, %1 : vector<16x1xi32>
    %c16_i32_0 = arith.constant 16 : i32
    %c0_i32 = arith.constant 0 : i32
    %4 = arith.cmpi eq, %c16_i32_0, %c0_i32 : i32
    %c1_i32 = arith.constant 1 : i32
    %5 = arith.select %4, %c1_i32, %c16_i32_0 : i32
    %6 = vector.broadcast %5 : i32 to vector<16x1xi32>
    %7 = arith.remsi %3, %6 : vector<16x1xi32>
    %c0_i32_1 = arith.constant 0 : i32
    %8 = vector.broadcast %c0_i32_1 : i32 to vector<16x1xi32>
    %9 = arith.cmpi ne, %7, %8 : vector<16x1xi32>
    %c0_i32_2 = arith.constant 0 : i32
    %10 = vector.broadcast %c0_i32_2 : i32 to vector<16x1xi32>
    %11 = arith.cmpi slt, %7, %10 : vector<16x1xi32>
    %c0_i32_3 = arith.constant 0 : i32
    %12 = arith.cmpi slt, %5, %c0_i32_3 : i32
    %13 = vector.broadcast %12 : i1 to vector<16x1xi1>
    %14 = vector.broadcast %13 : vector<16x1xi1> to vector<16x1xi1>
    %15 = arith.xori %11, %14 : vector<16x1xi1>
    %16 = arith.andi %15, %9 : vector<16x1xi1>
    %17 = vector.broadcast %5 : i32 to vector<16x1xi32>
    %18 = arith.addi %7, %17 : vector<16x1xi32>
    %19 = arith.select %16, %18, %7 : vector<16x1xi1>, vector<16x1xi32>
    %20 = arith.sitofp %19 : vector<16x1xi32> to vector<16x1xf32>
    %c0 = arith.constant 0 : index
    %c0_4 = arith.constant 0 : index
    %21 = vector.load %arg2[%c0, %c0_4] : memref<1x128xf32, #tpu.memory_space<vmem>>, vector<1x128xf32>
    %22 = vector.broadcast %20 : vector<16x1xf32> to vector<16x128xf32>
    %23 = vector.broadcast %21 : vector<1x128xf32> to vector<16x128xf32>
    %24 = arith.mulf %22, %23 : vector<16x128xf32>
    %c0_5 = arith.constant 0 : index
    %c0_6 = arith.constant 0 : index
    %25 = vector.load %arg3[%c0_5, %c0_6] : memref<1x128xf32, #tpu.memory_space<vmem>>, vector<1x128xf32>
    %26 = vector.broadcast %25 : vector<1x128xf32> to vector<16x128xf32>
    %27 = arith.addf %24, %26 : vector<16x128xf32>
    %c0_7 = arith.constant 0 : index
    %c0_8 = arith.constant 0 : index
    %28 = vector.load %arg4[%c0_7, %c0_8] : memref<16x128xf32, #tpu.memory_space<vmem>>, vector<16x128xf32>
    %29 = arith.addf %28, %27 : vector<16x128xf32>
    %c0_9 = arith.constant 0 : index
    %c0_10 = arith.constant 0 : index
    %30 = vector.load %arg5[%c0_9, %c0_10] : memref<16x128xf32, #tpu.memory_space<vmem>>, vector<16x128xf32>
    tpu.vector_store %arg5[%c0_9, %c0_10], %29 {strides = array<i32>} : memref<16x128xf32, #tpu.memory_space<vmem>>, vector<16x128xf32>,
    return
  }
  func.func @transform_0(%arg0: i32, %arg1: i32) -> (i32, i32) {
    %c0_i32 = arith.constant 0 : i32
    %c0_i32_0 = arith.constant 0 : i32
    return %c0_i32, %arg1 : i32, i32
  }
  func.func @transform_1(%arg0: i32, %arg1: i32) -> (i32, i32) {
    %c0_i32 = arith.constant 0 : i32
    %c0_i32_0 = arith.constant 0 : i32
    return %c0_i32, %arg1 : i32, i32
  }
  func.func @transform_2(%arg0: i32, %arg1: i32) -> (i32, i32) {
    %c0_i32 = arith.constant 0 : i32
    return %arg0, %arg1 : i32, i32
  }
  func.func @transform_3(%arg0: i32, %arg1: i32) -> (i32, i32) {
    %c0_i32 = arith.constant 0 : i32
    return %arg0, %arg1 : i32, i32
  }
}

</mosaic_0001>

<bundles_post_ra>
// kernel: tpu_custom_call.1
= control target key start
LH: loop header
LB: loop body
LE: loop exit
PB: predicated region body
PF: predicated region fallthrough
CT: control target
= control target key end

     0   :  { %s889_s0 = inlined_call_operand.hbm [shape: f32[1,128], index: 0, kind: input, shape index: {}]   ;;  %s890_s1 = inlined_call_operand.vmem [shape: f32[1,128], index: 1, kind: input, shape index: {}]   ;;  %s891_s2 = inlined_call_operand.hbm [shape: f32[32,128], index: 2, kind: input, shape index: {}]   ;;  %s892_s3 = inlined_call_operand.hbm [shape: f32[32,128], index: 3, kind: output, shape index: {}]  }
   0x1   :  { %894 = sst [smem:[#allocation11_spill]] %s889_s0 }
   0x2   :  { %8 = vsyncpa [#allocation3], 0 }
   0x3   :  { %9 = vsyncpa [#allocation6], 0 }
   0x4   :  { %11 = vsyncpa [#allocation6 + $0x1], 0 }
   0x5   :  { %12 = vsyncpa [#allocation4], 0 }
   0x6   :  { %14 = vsyncpa [#allocation4 + $0x1], 0  ;;  %s694_s12 = smov 0   ;;  %s696_s13 = smov 0  }
   0x7   :  { %s698_s14 = smov 0   ;;  %s700_s15 = smov 0  }
   0x8   :  { %s702_s16 = smov 0   ;;  %s704_s17 = smov 0  }
   0x9 LB: > { %s425_s18 = sadd.s32 4294967295, %s665_s17   ;;  %s426_s19 = sadd.s32 4294967294, %s665_s17   ;;  %s665_s17 = sphi %s704_s17, %s20_s17   ;;  %s661_s16 = sphi %s702_s16, %s912_s16   ;;  %s657_s15 = sphi %s700_s15, %s911_s15   ;;  %s653_s14 = sphi %s698_s14, %s910_s14   ;;  %s649_s13 = sphi %s696_s13, %s909_s13   ;;  %s645_s12 = sphi %s694_s12, %s908_s12  }
   0xa   : > { %s93_s20 = sadd.s32 1, %s653_s14  ;;  %p100_p0 = scmp.ne.s32.totalorder %s653_s14, %s649_s13 }
   0xb   : > { %p101_p1 = scmp.eq.s32.totalorder %s665_s17, 0  ;;  %p106_p2 = scmp.ne.s32.totalorder %s649_s13, %s645_s12 }
   0xc   : > { %p732_p3 = scmp.eq.s32.totalorder %s425_s18, 0  ;;  %p132_p4 = scmp.eq.s32.totalorder %s425_s18, 1 }
   0xd   : > { %p736_p5 = por %p101_p1, %p100_p0  ;;  %p138_p6 = scmp.eq.s32.totalorder %s426_s19, 1 }
   0xe   : > { %p742_p7 = por %p732_p3, %p106_p2  ;;  %p746_p8 = por %p132_p4, %p100_p0 }
   0xf   : > { %p750_p9 = por %p138_p6, %p106_p2  ;;  %p427_p10 = scmp.ge.s32.totalorder %s665_s17, 1 }
  0x10   : > { %s898_s24 = scalar_select %p746_p8, 1, 0 }
  0x11   : > { %s899_s25 = scalar_select %p750_p9, 1, 0 }
  0x12   : > { %p145_p11 = scmp.lt.s32.totalorder %s665_s17, 3  ;;  %s667_s27 = smov [#allocation2]  }
  0x13   : > { %s160_s28 = sshll.u32 %s667_s27, 4  ;;  %p471_p1 = scmp.lt.s32.totalorder %s665_s17, 2  ;;  %s161_s28 = int_to_ptr.vmem [resolvable:$true] %s160_s28 }
  0x14   : > { %p757_p13 = pnand %p427_p10, %p145_p11  ;;  %s32_s4 = sadd.s32 1, %s661_s16 }
  0x15   : > { %p766_p4 = pnand %p471_p1, %p736_p5  ;;  %p777_p6 = scmp.ge.s32.totalorder %s32_s4, 2 }
  0x16   : > { %p458_p0 = pneg %p757_p13  ;;  %s177_s6 = sand.u32 1, %s653_s14  }
  0x17   : > { %s538_s7 = scalar_lea.vmem %s161_s28, 16  ;;  %s545_s8 = scalar_lea.vmem %s161_s28, 32 }
  0x18   : > { %p772_p2 = pnand %p458_p0, %p732_p3  ;;  %p539_p11 = scmp.ne.s32.totalorder %s161_s28, %s538_s7 }
  0x19   : > { %p546_p12 = scmp.lt.s32.totalorder %s161_s28, %s161_s28  ;;  %p547_p9 = scmp.lt.s32.totalorder %s545_s8, %s538_s7 }
  0x1a   : > { %p529_p10 = pneg %p772_p2 }
  0x1b   : > { %p548_p0 = por %p547_p9, %p546_p12 }
  0x1c   : > { %p541_p5 = pnand %p539_p11, %p529_p10 }
  0x1e   : > { %p542_p1 = pneg %p541_p5 }
  0x20   : > { %p549_p8 = pnand %p548_p0, %p542_p1 }
  0x22   : > { %552 = shalt.err (!%p549_p8)
}
  0x23   : > { %s904_s0 = sld [smem:[#allocation11_spill]]  ;;  %s914_s4 = smov (%p777_p6, %s32_s4), 0 }
  0x24   : > { %s431_s11 = sshll.u32 %s177_s6, 4  ;;  %s88_s18 = ssub.s32 %s661_s16, %s914_s4 }
  0x25   : > { %p91_p9 = scmp.eq.s32.totalorder %s88_s18, 0  ;;  %s448_s19 = sshll.u32 %s661_s16, 8 }
  0x26   : > { %s188_s30 = scalar_lea.hbm %s891_s2, %s448_s19  ;;  %s181_s7 = scalar_lea.vmem [#allocation5], %s431_s11 }
  0x27   : > { %s189_s8 = sshll.u32 %s181_s7, 4  ;;  %s178_s10 = scalar_lea.sflag [#allocation6], %s177_s6  ;;  %s190_s8 = int_to_ptr.vmem [resolvable:$true] %s189_s8 }
  0x28   : > { %s802_s9 = scalar_select %p91_p9, %s653_s14, %s93_s20  }
  0x29   : > { %461 = dma.hbm_to_vmem [thread:$0]  (!%p772_p2), %s904_s0, 16, %s161_s28, [#allocation3]  }
  0x2a   : > { %p555_p8 = pneg %p766_p4  ;;  %s566_s28 = scalar_lea.vmem %s190_s8, 256 }
  0x2b   : > { %p567_p12 = scmp.ne.s32.totalorder %s190_s8, %s566_s28  ;;  %s668_s5 = smov [#allocation5]  }
  0x2c   : > { %s571_s18 = sshll.u32 %s668_s5, 4  ;;  %s572_s18 = int_to_ptr.vmem [resolvable:$false] %s571_s18 }
  0x2d   : > { %p569_p2 = pnand %p567_p12, %p555_p8  ;;  %s573_s0 = scalar_lea.vmem %s572_s18, 512 }
  0x2e   : > { %p574_p10 = scmp.lt.s32.totalorder %s190_s8, %s572_s18  ;;  %p575_p11 = scmp.lt.s32.totalorder %s573_s0, %s566_s28 }
  0x2f   : > { %p570_p6 = pneg %p569_p2 }
  0x30   : > { %p576_p5 = por %p575_p11, %p574_p10 }
  0x32   : > { %p577_p1 = pnand %p576_p5, %p570_p6 }
  0x34   : > { %580 = shalt.err (!%p577_p1)
}
  0x35   : > { %s669_s11 = smov 128   ;;  %s670_s20 = smov 8  }
  0x36   : > { %465 = dma.hbm_to_vmem [thread:$0]  (!%p766_p4), %s188_s30, 256, %s190_s8, %s178_s10, %s669_s11, %s669_s11, %s670_s20  }
  0x37   : > { %201 = sbr.rel (%p757_p13) target bundleno = 107 (0x6b), region = 32 }
  0x3c   : > { %632 = dma.done.wait (%p732_p3), [#allocation3], 16  }
  0x3d   : > { %634 = vsyncadd (%p732_p3), [#allocation3], 4294967280  ;;  %s815_s0 = sand.u32 1, %s649_s13  }
  0x3e   : > { %s436_s6 = sshll.u32 %s815_s0, 4  ;;  %s208_s19 = scalar_lea.sflag [#allocation6], %s815_s0 }
  0x3f   : > { %s821_s29 = scalar_lea.vmem [#allocation5], %s436_s6 }
  0x40   : > { %636 = dma.done.wait (%p742_p7), %s208_s19, 256  }
  0x41   : > { %638 = vsyncadd (%p742_p7), %s208_s19, 4294967040  ;;  %s438_s21 = sshll.u32 %s657_s15, 4  ;;  %v243_v0 = vlaneseq  ;;  %v441_v18 = vld [vmem:[#allocation2] ss:$0 sm:$0xff]  ;;  %v293_v25 = vld [vmem:[%s821_s29] sm:$0xff]  ;;  %s236_s22 = scalar_lea.vmem [#allocation7], %s436_s6 }
  0x42   : > { %v246_v1 = vstv %s438_s21  ;;  %v442_v21 = vld [vmem:[%s890_s1] ss:$0 sm:$0xff]  ;;  %s314_s27 = sshll.u32 %s236_s22, 4  ;;  %s449_s30 = sshll.u32 %s657_s15, 8  ;;  %s836_s27 = int_to_ptr.vmem [resolvable:$true] %s314_s27 }
  0x43   : > { %v244_v2 = vshrl.u32 %v243_v0, 7  ;;  %v294_v28 = vld [vmem:[%s821_s29 + $0x8] sm:$0xff]  ;;  %s841_s10 = scalar_lea.hbm %s892_s3, %s449_s30  ;;  %s300_s28 = scalar_lea.sflag [#allocation4], %s815_s0 }
  0x44   : > { %s581_s5 = scalar_lea.vmem %s836_s27, 256  ;;  %p905_p7 = scmp.ne.s32.totalorder %s898_s24, 0 }
  0x45   : > { %v247_v3 = vadd.s32 %v246_v1, %v244_v2  ;;  %v245_v4 = vadd.s32 8, %v244_v2  ;;  %p582_p3 = scmp.ne.s32.totalorder %s836_s27, %s581_s5  ;;  %s671_s15 = smov [#allocation7]  }
  0x46   : > { %s585_s18 = sshll.u32 %s671_s15, 4  ;;  %s586_s18 = int_to_ptr.vmem [resolvable:$false] %s585_s18 }
  0x47   : > { %v250_v5 = vsub.s32 0, %v247_v3  ;;  %v248_v6 = vadd.s32 %v246_v1, %v245_v4  ;;  %vm249_vm0 = vcmp.lt.s32.totalorder %v247_v3, 0  ;;  %p583_p13 = pnand %p582_p3, %p905_p7  ;;  %s587_s11 = scalar_lea.vmem %s586_s18, 512 }
  0x48   : > { %p588_p0 = scmp.lt.s32.totalorder %s836_s27, %s586_s18  ;;  %p589_p9 = scmp.lt.s32.totalorder %s587_s11, %s581_s5 }
  0x49   : > { %v439_v7 = vmin.u32 %v250_v5, %v247_v3  ;;  %v257_v8 = vsub.s32 0, %v248_v6  ;;  %vm256_vm1 = vcmp.lt.s32.totalorder %v248_v6, 0  ;;  %p584_p4 = pneg %p583_p13 }
  0x4a   : > { %p590_p8 = por %p589_p9, %p588_p0 }
  0x4b   : > { %v253_v9 = vand.u32 15, %v439_v7  ;;  %v440_v10 = vmin.u32 %v257_v8, %v248_v6 }
  0x4c   : > { %p591_p12 = pnand %p590_p8, %p584_p4 }
  0x4d   : > { %v254_v11 = vsub.s32 0, %v253_v9  ;;  %v260_v12 = vand.u32 15, %v440_v10 }
  0x4f   : > { %v255_v13 = vsel %vm249_vm0, %v254_v11, %v253_v9  ;;  %v261_v14 = vsub.s32 0, %v260_v12 }
  0x50   : > { %vm263_vm2 = vcmp.ne.s32.totalorder %v255_v13, 0  ;;  %vm265_vm3 = vcmp.lt.s32.totalorder %v255_v13, 0  ;;  %v269_v15 = vadd.s32 16, %v255_v13 }
  0x51   : > { %vm267_vm4 = vmand %vm265_vm3, %vm263_vm2  ;;  %v262_v16 = vsel %vm256_vm1, %v261_v14, %v260_v12 }
  0x52   : > { %v271_v17 = vsel %vm267_vm4, %v269_v15, %v255_v13  ;;  %vm264_vm5 = vcmp.ne.s32.totalorder %v262_v16, 0  ;;  %vm266_vm6 = vcmp.lt.s32.totalorder %v262_v16, 0  ;;  %v270_v19 = vadd.s32 16, %v262_v16 }
  0x53   : > { %v273_v20 = vcvt.s32.f32 %v271_v17  ;;  %vm268_vm7 = vmand %vm266_vm6, %vm264_vm5 }
  0x54   : > { %v272_v22 = vsel %vm268_vm7, %v270_v19, %v262_v16 }
  0x55   : > { %v282_v23 = vmul.f32 %v441_v18, %v273_v20  ;;  %v274_v24 = vcvt.s32.f32 %v272_v22 }
  0x57   : > { %v291_v26 = vadd.f32 %v442_v21, %v282_v23  ;;  %v283_v27 = vmul.f32 %v441_v18, %v274_v24 }
  0x59   : > { %v295_v29 = vadd.f32 %v293_v25, %v291_v26  ;;  %v292_v30 = vadd.f32 %v442_v21, %v283_v27 }
  0x5b   : > { %297 = vst [vmem:[%s236_s22] sm:$0xff] %v295_v29  ;;  %v296_v31 = vadd.f32 %v294_v28, %v292_v30 }
  0x5d   : > { %298 = vst [vmem:[%s236_s22 + $0x8] sm:$0xff] %v296_v31 }
  0x5e   : > { %594 = shalt.err (!%p591_p12)
}
  0x5f   : > { %s595_s20 = scalar_lea.hbm %s841_s10, 256  ;;  %s599_s29 = scalar_lea.hbm %s892_s3, 512 }
  0x60   : > { %p596_p2 = scmp.ne.s32.totalorder %s841_s10, %s595_s20  ;;  %p600_p11 = scmp.lt.s32.totalorder %s841_s10, %s892_s3 }
  0x61   : > { %p601_p5 = scmp.lt.s32.totalorder %s599_s29, %s595_s20 }
  0x62   : > { %p597_p6 = pnand %p596_p2, %p905_p7 }
  0x63   : > { %p602_p1 = por %p601_p5, %p600_p11 }
  0x64   : > { %p598_p10 = pneg %p597_p6 }
  0x66   : > { %p603_p3 = pnand %p602_p1, %p598_p10 }
  0x68   : > { %606 = shalt.err (!%p603_p3)
}
  0x69   : > { %s672_s26 = smov 128   ;;  %s673_s22 = smov 8  }
  0x6a   : > { %456 = dma.vmem_to_hbm [thread:$0]  (%p905_p7), %s836_s27, 256, %s841_s10, %s300_s28, %s672_s26, %s672_s26, %s673_s22  }
  0x6b PF: > { %s329_s30 = sand.u32 1, %s645_s12   ;;  %p906_p13 = scmp.ne.s32.totalorder %s899_s25, 0 }
  0x6c   : > { %p907_p4 = scmp.ge.s32.totalorder %s665_s17, 2  ;;  %s330_s7 = scalar_lea.sflag [#allocation4], %s329_s30 }
  0x6e   : > { %p467_p0 = pnand %p907_p4, %p906_p13 }
  0x70   : > { %p468_p9 = pneg %p467_p0 }
  0x72   : > { %640 = dma.done.wait (%p468_p9), %s330_s7, 256  }
  0x73   : > { %642 = vsyncadd (%p468_p9), %s330_s7, 4294967040  ;;  %s20_s17 = sadd.s32 1, %s665_s17   ;;  %s908_s12 = smov %s649_s13 }
  0x74   : > { %p17_p8 = scmp.ge.s32.totalorder %s20_s17, 4   ;;  %s909_s13 = smov %s653_s14 }
  0x75   : > { %s910_s14 = smov %s802_s9  ;;  %s911_s15 = smov %s661_s16 }
  0x76   : > { %s912_s16 = smov %s914_s4  ;;  %19 = sbr.rel (!%p17_p8) target bundleno = 9 (0x9), region = 86 }
  0x7b   :  { %335 = vsyncpa [#allocation3], 1 }
  0x7c   :  { %337 = vsyncpa [#allocation3 + $0x1], 1 }
  0x7d   :  { %338 = vsyncpa [#allocation6], 1 }
  0x7e   :  { %340 = vsyncpa [#allocation6 + $0x1], 1 }
  0x7f   :  { %341 = vsyncpa [#allocation4], 1 }
  0x80   :  { %343 = vsyncpa [#allocation4 + $0x1], 1 }

</bundles_post_ra>
